<compile_context>
chip_gen: v5e
topology: v5e:2x2
jax: 0.10.0
libtpu: 0.0.40
codegen_flags: <defaults>
</compile_context>

<pallas_src>
import functools
import math

import jax
import jax.numpy as jnp
from jax.experimental import pallas as pl
from jax.experimental.pallas import tpu as pltpu

_MAX_ROW_TILE = 2048                 # rows per grid step (multiple of 32)


@functools.lru_cache(maxsize=None)
def _gen_params():
    """(vmem_limit_bytes, tile_byte_budget, min_pallas_bytes, num_tensorcores)."""
    kind = ""
    try:
        kind = jax.devices()[0].device_kind.lower()
    except Exception:
        pass
    if "v7" in kind or "7x" in kind:
        # 64 MiB VMEM/TC, ~3.2 TB/s HBM, 2 TC/chip -> bigger per-step bytes,
        # smaller VMEM ceiling, crossover vs fused XLA moves to larger shapes.
        params = (48 << 20, 16 << 20, 1 << 20, 2)
    elif "v6" in kind:
        # 128 MiB physical VMEM; raise the 32 MiB scoped default explicitly
        # so the large block-sets are actually legal.
        params = (64 << 20, 16 << 20, 512 << 10, 1)
    elif "v5" in kind:
        params = (64 << 20, 12 << 20, 256 << 10, 1)
    else:
        params = (48 << 20, 8 << 20, 256 << 10, 1)
    vmem_limit, tile_budget, min_pallas, num_tc = params
    try:
        cap = int(pltpu.get_tpu_info().vmem_capacity_bytes)
        vmem_limit = min(vmem_limit, (cap * 3) // 4)
        tile_budget = min(tile_budget, vmem_limit // 3)
    except Exception:
        pass
    return vmem_limit, tile_budget, min_pallas, num_tc


def _shift_right_kernel(s_ref, x_ref, o_ref, *, ws, keep, bcast_s):
    # s_ref: (TR, ws) or (1, ws) when broadcast; x_ref: (TR, x_blk_w >= keep);
    # o_ref: (TR, ws + keep).  Casts happen here on the VPU (free slot).
    rows = o_ref.shape[0]
    s_blk = s_ref[...]
    if bcast_s:
        s_blk = jnp.broadcast_to(s_blk, (rows, ws))
    s_blk = s_blk.astype(o_ref.dtype)
    x_blk = x_ref[:, :keep].astype(o_ref.dtype)
    if ws % 128 == 0:
        # Both stores land on 128-lane boundaries -> unmasked, lane-dense vst.
        o_ref[:, :ws] = s_blk
        o_ref[:, ws:] = x_blk
    else:
        # Seam not lane-aligned: build the full row in vregs and emit a single
        # lane-dense full-width store instead of a masked store at offset ws.
        o_ref[...] = jnp.concatenate([s_blk, x_blk], axis=-1)


def _pick_row_tile(rows, bytes_per_row, *, tile_byte_budget, num_tc):
    # Budget-limited tile in multiples of 32 rows (covers bf16 (16,128) and
    # int8/fp8 (32,128) sublane packing without split packed tiles).
    tr = min(_MAX_ROW_TILE, max(32, tile_byte_budget // max(1, bytes_per_row)))
    tr -= tr % 32
    tr = max(32, tr)
    # Guarantee multiple grid steps whenever the problem is big enough to
    # split: the BlockSpec pipeline needs >= ~3 steps for DMA-in / store /
    # DMA-out overlap, and v7x needs several steps per TC for the "parallel"
    # axis to shard across its 2 TensorCores.
    target_steps = max(3, 4 * num_tc)
    if rows >= 32 * target_steps:
        cap = max(32, (rows // target_steps) // 32 * 32)
        tr = min(tr, cap)
    if rows % 8 == 0:
        tr = min(tr, rows)
    elif rows < tr:
        tr = rows        # block equals full dim (legal even when rows % 8 != 0)
    # Trailing partial block (rows % tr != 0) is handled by Pallas padding of
    # out-of-range reads and masking of out-of-range output rows.
    return tr


def _reference_jnp(s, x, lead, ws, keep, out_dtype):
    # Plain-JAX path for degenerate / tiny inputs (XLA fuses into consumers).
    if ws == 0:
        return jnp.broadcast_to(x[..., :keep], lead + (keep,)).astype(out_dtype)
    s_b = jnp.broadcast_to(s, lead + (ws,)).astype(out_dtype)
    if keep == 0:
        return s_b
    x_b = jnp.broadcast_to(x[..., :keep], lead + (keep,)).astype(out_dtype)
    return jnp.concatenate([s_b, x_b], axis=-1)


def shift_right(s, x, output_width=None, *, force_pallas=False):
    # Matches the torch module exactly: `output_width or x.size(-1)`
    # (both None and 0 fall back to x's width).
    output_width = output_width or x.shape[-1]
    ws = s.shape[-1]
    wx = x.shape[-1]
    assert output_width <= ws + wx
    assert output_width >= ws
    keep = output_width - ws          # lanes of x that survive truncation

    # Leading (batch) shape after torch-style rank broadcast.
    s_lead, x_lead = s.shape[:-1], x.shape[:-1]
    if s.ndim == x.ndim:
        assert s_lead == x_lead, "leading dims must match when ranks are equal"
        lead = x_lead
    elif s.ndim < x.ndim:
        d = x.ndim - s.ndim
        assert x_lead[d:] == s_lead, "s leading dims must match trailing x dims"
        lead = x_lead
    else:
        d = s.ndim - x.ndim
        assert s_lead[d:] == x_lead, "x leading dims must match trailing s dims"
        lead = s_lead

    out_dtype = jnp.promote_types(s.dtype, x.dtype)
    rows = math.prod(lead) if lead else 1
    out_item = jnp.dtype(out_dtype).itemsize
    s_item = jnp.dtype(s.dtype).itemsize
    x_item = jnp.dtype(x.dtype).itemsize
    vmem_limit, tile_budget, min_pallas_bytes, num_tc = _gen_params()

    approx_bytes = rows * (ws * s_item + keep * x_item + output_width * out_item)

    # Fast paths: degenerate widths, empty batch, or tiny total volume.
    if (ws == 0 or keep == 0 or rows == 0
            or (not force_pallas and approx_bytes < min_pallas_bytes)):
        return _reference_jnp(s, x, lead, ws, keep, out_dtype)

    # --- flatten to 2-D without materializing broadcasts or HBM dtype casts ---
    bcast_s = False
    if s.ndim < x.ndim and math.prod(s_lead) == 1:
        # Rank-broadcast s: ship a single (1, ws) row; broadcast inside the
        # kernel (saves rows*ws HBM write + read traffic).
        s2 = jnp.reshape(s, (1, ws))
        bcast_s = True
    else:
        if s.ndim < x.ndim:
            # TODO(synk): a modular block index_map could reuse s blocks when
            # prod(s_lead) > 1 instead of materializing the broadcast in HBM;
            # rare path, falls back.
            s_full = jnp.broadcast_to(s, lead + (ws,))
        else:
            s_full = s
        s2 = jnp.reshape(s_full, (rows, ws))

    if s.ndim > x.ndim:
        # TODO(synk): rare case (x rank-broadcast); materializes x in HBM.
        x_full = jnp.broadcast_to(x, lead + (wx,))
    else:
        x_full = x
    x2 = jnp.reshape(x_full, (rows, wx))

    # DMA only the lanes of x we need: kept width rounded up to the next
    # 128-lane boundary (never more than wx).  In-kernel [:, :keep] drops the
    # over-fetched remainder.
    if keep == wx or keep % 128 == 0:
        x_blk_w = keep
    else:
        x_blk_w = min(wx, ((keep + 127) // 128) * 128)

    bytes_per_row = ws * s_item + x_blk_w * x_item + output_width * out_item
    tr = _pick_row_tile(rows, bytes_per_row,
                        tile_byte_budget=tile_budget, num_tc=num_tc)
    grid = (pl.cdiv(rows, tr),)

    if bcast_s:
        s_spec = pl.BlockSpec((1, ws), lambda i: (0, 0))
    else:
        s_spec = pl.BlockSpec((tr, ws), lambda i: (i, 0))
    x_spec = pl.BlockSpec((tr, x_blk_w), lambda i: (i, 0))
    o_spec = pl.BlockSpec((tr, output_width), lambda i: (i, 0))

    s_read_rows = 1 if bcast_s else rows
    cost = pl.CostEstimate(
        flops=0,
        transcendentals=0,
        bytes_accessed=int(s_read_rows * ws * s_item
                           + rows * x_blk_w * x_item
                           + rows * output_width * out_item),
    )

    out = pl.pallas_call(
        functools.partial(_shift_right_kernel, ws=ws, keep=keep, bcast_s=bcast_s),
        out_shape=jax.ShapeDtypeStruct((rows, output_width), out_dtype),
        grid=grid,
        in_specs=[s_spec, x_spec],
        out_specs=o_spec,
        compiler_params=pltpu.CompilerParams(
            dimension_semantics=("parallel",),   # rows shard over v7x's 2 TCs
            vmem_limit_bytes=vmem_limit),
        cost_estimate=cost,
    )(s2, x2)
    return jnp.reshape(out, lead + (output_width,))


if __name__ == "__main__":
    key = jax.random.PRNGKey(0)
    k_s, k_x, k_s3, k_x3, k_s5, k_x5 = jax.random.split(key, 6)

    # Test 1: small same-rank shapes (batch=2, channels=4, s width 4, x width 16).
    s = jax.random.normal(k_s, (2, 4, 4), dtype=jnp.float32)
    x = jax.random.normal(k_x, (2, 4, 16), dtype=jnp.float32)
    out = jax.block_until_ready(shift_right(s, x, force_pallas=True))
    ref = jnp.concatenate([s, x[..., :12]], axis=-1)
    assert out.shape == (2, 4, 16)
    assert jnp.allclose(out, ref), "mismatch vs reference"

    # Test 2: broadcast path (rank-1 s) — exercises the in-kernel s broadcast.
    s1 = jax.random.normal(k_s, (4,), dtype=jnp.float32)
    out2 = jax.block_until_ready(shift_right(s1, x, force_pallas=True))
    ref2 = jnp.concatenate([jnp.broadcast_to(s1, (2, 4, 4)), x[..., :12]], axis=-1)
    assert jnp.allclose(out2, ref2), "broadcast mismatch vs reference"

    # Test 3: mixed dtypes (bf16 x, f32 s) — the cast now happens in-kernel.
    x_bf = x.astype(jnp.bfloat16)
    out3 = jax.block_until_ready(shift_right(s, x_bf, force_pallas=True))
    ref3 = jnp.concatenate([s, x_bf[..., :12].astype(jnp.float32)], axis=-1)
    assert out3.dtype == jnp.float32
    assert jnp.allclose(out3, ref3), "mixed-dtype mismatch vs reference"

    # Test 4: larger shape — exercises multi-step row tiling, the 128-aligned
    # trimmed x DMA (keep=384), the aligned two-store path (ws=128), and the
    # auto (non-forced) Pallas path.
    s3 = jax.random.normal(k_s3, (8, 128, 128), dtype=jnp.float32)
    x3 = jax.random.normal(k_x3, (8, 128, 512), dtype=jnp.float32)
    out4 = jax.block_until_ready(shift_right(s3, x3))
    ref4 = jnp.concatenate([s3, x3[..., :384]], axis=-1)
    assert out4.shape == (8, 128, 512)
    assert jnp.allclose(out4, ref4), "large-shape mismatch vs reference"

    # Test 5: rows not divisible by the row tile — exercises the trailing
    # partial grid block (padded reads / masked output rows) and the
    # concatenate store path (ws=64 is not 128-aligned).
    s5 = jax.random.normal(k_s5, (1000, 64), dtype=jnp.float32)
    x5 = jax.random.normal(k_x5, (1000, 256), dtype=jnp.float32)
    out5 = jax.block_until_ready(shift_right(s5, x5, force_pallas=True))
    ref5 = jnp.concatenate([s5, x5[..., :192]], axis=-1)
    assert out5.shape == (1000, 256)
    assert jnp.allclose(out5, ref5), "partial-block mismatch vs reference"

    # Test 6: explicit output_width + rows % 8 != 0 (full-dim row block).
    s6 = jax.random.normal(k_s, (3, 5, 8), dtype=jnp.float32)
    x6 = jax.random.normal(k_x, (3, 5, 32), dtype=jnp.float32)
    out6 = jax.block_until_ready(shift_right(s6, x6, 24, force_pallas=True))
    ref6 = jnp.concatenate([s6, x6[..., :16]], axis=-1)
    assert out6.shape == (3, 5, 24)
    assert jnp.allclose(out6, ref6), "output_width mismatch vs reference"

    print("KERNEL_OK")
</pallas_src>

<mosaic_0001>
module attributes {stable_mosaic.version = 11 : i64} {
  func.func @_shift_right_kernel(%arg0: i32, %arg1: memref<8x4xf32, #tpu.memory_space<vmem>>, %arg2: memref<8x16xf32, #tpu.memory_space<vmem>>, %arg3: memref<8x16xf32, #tpu.memory_space<vmem>>) attributes {dimension_semantics = [#tpu.dimension_semantics<parallel>], iteration_bounds = array<i64: 1>, scalar_prefetch = 0 : i64, scratch_operands = 0 : i64, tpu.core_type = #tpu.core_type<tc>, window_params = [{transform_indices = @transform_0, window_bounds = array<i64: 8, 4>}, {transform_indices = @transform_1, window_bounds = array<i64: 8, 16>}, {transform_indices = @transform_2, window_bounds = array<i64: 8, 16>}]} {
    %c0 = arith.constant 0 : index
    %c0_0 = arith.constant 0 : index
    %0 = vector.load %arg1[%c0, %c0_0] : memref<8x4xf32, #tpu.memory_space<vmem>>, vector<8x4xf32>
    %c0_1 = arith.constant 0 : index
    %c0_2 = arith.constant 0 : index
    %1 = vector.load %arg2[%c0_1, %c0_2] : memref<8x16xf32, #tpu.memory_space<vmem>>, vector<8x12xf32>
    %2 = tpu.concatenate %0, %1 in 1 : vector<8x4xf32>, vector<8x12xf32> -> vector<8x16xf32>
    %c0_3 = arith.constant 0 : index
    %c0_4 = arith.constant 0 : index
    %3 = vector.load %arg3[%c0_3, %c0_4] : memref<8x16xf32, #tpu.memory_space<vmem>>, vector<8x16xf32>
    tpu.vector_store %arg3[%c0_3, %c0_4], %2 {strides = array<i32>} : memref<8x16xf32, #tpu.memory_space<vmem>>, vector<8x16xf32>,
    return
  }
  func.func @transform_0(%arg0: i32) -> (i32, i32) {
    %c0_i32 = arith.constant 0 : i32
    %c0_i32_0 = arith.constant 0 : i32
    return %arg0, %c0_i32 : i32, i32
  }
  func.func @transform_1(%arg0: i32) -> (i32, i32) {
    %c0_i32 = arith.constant 0 : i32
    %c0_i32_0 = arith.constant 0 : i32
    return %arg0, %c0_i32 : i32, i32
  }
  func.func @transform_2(%arg0: i32) -> (i32, i32) {
    %c0_i32 = arith.constant 0 : i32
    %c0_i32_0 = arith.constant 0 : i32
    return %arg0, %c0_i32 : i32, i32
  }
}

</mosaic_0001>

<bundles_post_ra>
// kernel: tpu_custom_call.1
= control target key start
LH: loop header
LB: loop body
LE: loop exit
PB: predicated region body
PF: predicated region fallthrough
CT: control target
= control target key end

     0   :  { %s92_s0 = inlined_call_operand.vmem [shape: f32[8,4], index: 0, kind: input, shape index: {}]   ;;  %s93_s1 = inlined_call_operand.vmem [shape: f32[8,16], index: 1, kind: input, shape index: {}]   ;;  %s94_s2 = inlined_call_operand.hbm [shape: f32[8,16], index: 2, kind: output, shape index: {}]  }
   0x1   :  { %v13_v0 = vld [vmem:[%s93_s1] sm:$0xff] }
   0x2   :  { %7 = vsyncpa [#allocation3], 0  ;;  %s66_s11 = smov 4   ;;  %s67_s12 = smov [#allocation2]   ;;  %v12_v1 = vld [vmem:[%s92_s0] sm:$0xff]  ;;  %vm18_vm0 = vcmask 31744  }
   0x3   :  { %15 = vrot.lane.b32.xlu0 %v13_v0, %s66_s11  ;;  %s27_s13 = sshll.u32 %s67_s12, 4  ;;  %s29_s16 = sshll.u32 %s94_s2, 4  ;;  %vm20_vm1 = vcmask 130048   ;;  %s28_s13 = int_to_ptr.vmem [resolvable:$true] %s27_s13  ;;  %s30_s16 = int_to_ptr.hbm [resolvable:$true] %s29_s16 }
  0x75   :  { %v16_v2 = vpop.permute.xlu0 %15 }
  0x76   :  { %v19_v3 = vsel %vm18_vm0, %v12_v1, %v16_v2 }
  0x77   :  { %21 = vst.msk [vmem:[#allocation2] sm:$0xff] %vm20_vm1, %v19_v3 }
  0x78   :  { %32 = dma.vmem_to_hbm [thread:$0]  %s28_s13, 128, %s30_s16, [#allocation3]  }
  0x79   :  { %64 = dma.done.wait [#allocation3], 128  }
  0x7a   :  { %65 = vsyncadd [#allocation3], 4294967168 }
  0x7b   :  { %37 = vsyncpa [#allocation3], 1 }

</bundles_post_ra>
